<compile_context>
chip_gen: v7x
topology: tpu7x:2x2x1
jax: 0.10.0
libtpu: 0.0.40
codegen_flags: <defaults>
</compile_context>

<pallas_src>
import functools
import math

import jax
import jax.numpy as jnp
from jax.experimental import pallas as pl
from jax.experimental.pallas import tpu as pltpu

_LANES = 128
_F32_EPS = float(jnp.finfo(jnp.float32).eps)


def _round_up(x, m):
    return ((x + m - 1) // m) * m


# --------------------------- kernels ---------------------------
def _maxdiff_kernel(pred_ref, target_ref, pmax_ref):
    """Per-block max of |pred - target|, kept as an (8, 128) slab (VPU-only)."""
    diff = jnp.abs(pred_ref[...].astype(jnp.float32)
                   - target_ref[...].astype(jnp.float32))
    pmax_ref[...] = jnp.max(diff.reshape(-1, 8, _LANES), axis=0)


def _regression_kernel(*refs, loss_name, has_mask):
    """Fused per-element error + per-block (8,128) partial sums."""
    if loss_name == "berhu":
        scal_ref, refs = refs[0], refs[1:]
    if has_mask:
        pred_ref, target_ref, mask_ref, err_ref, esum_ref, msum_ref = refs
    else:
        pred_ref, target_ref, err_ref, esum_ref = refs

    pred = pred_ref[...].astype(jnp.float32)
    target = target_ref[...].astype(jnp.float32)
    diff = jnp.abs(pred - target)                     # dense L1

    if loss_name == "l1":
        per_elem = diff
    elif loss_name == "log_l1":
        per_elem = jnp.log1p(diff)                    # log(1 + |d|)  (EUP)
    elif loss_name == "berhu":
        delta = scal_ref[0]                           # scalar from SMEM
        inv_denom = scal_ref[1]                       # 1/(2*delta + eps), precomputed
        quad = (diff * diff + delta * delta) * inv_denom
        per_elem = jnp.where(diff <= delta, diff, quad)
    else:
        raise ValueError(f"unknown loss_name: {loss_name}")

    if has_mask:
        mask = mask_ref[...].astype(jnp.float32)
        err = mask * per_elem
        msum_ref[...] = jnp.sum(mask.reshape(-1, 8, _LANES), axis=0)
    else:
        err = per_elem                                # mask == 1 everywhere

    err_ref[...] = err.astype(err_ref.dtype)
    esum_ref[...] = jnp.sum(err.reshape(-1, 8, _LANES), axis=0)


# --------------------------- wrapper ---------------------------
def regression_loss(pred, target, mask=None, *, loss_name="berhu",
                    delta=0.2, dynamic=True, tile_rows=2048):
    """Forward pass of RegressionLoss. Returns (loss, {'err_regr', 'mask_regr'})."""
    orig_shape = pred.shape
    total = math.prod(orig_shape)
    has_mask = mask is not None
    mask_orig = mask

    # Native dtypes straight through; only bool is widened (1-bit VMEM loads are
    # layout-restricted). int8/uint8/bf16/f32 masks stream at their native width.
    if has_mask and mask.dtype == jnp.bool_:
        mask = mask.astype(jnp.uint8)

    # Sublane multiple for the tiled streams: 8 (32-bit), 16 (16-bit), 32 (8-bit).
    itemsizes = [pred.dtype.itemsize, target.dtype.itemsize]
    if has_mask:
        itemsizes.append(mask.dtype.itemsize)
    sublane = max(8, 32 // min(itemsizes))

    # Lane-dense (rows, 128) view; grid of nb row-tiles, nb even so both v7x TCs
    # are used; tile_r chosen so nb*tile_r barely over-covers rows (usually ==).
    rows = pl.cdiv(total, _LANES)
    nb = _round_up(max(2, pl.cdiv(rows, int(tile_rows))), 2)
    tile_r = _round_up(pl.cdiv(rows, nb), sublane)
    padded_rows = nb * tile_r
    padded_total = padded_rows * _LANES
    needs_pad = padded_total != total

    def _pack(x):
        xf = jnp.ravel(x)                             # free reshape, no cast
        if needs_pad:
            xf = jnp.pad(xf, (0, padded_total - total))   # pads with 0 -> err/mask 0
        return xf.reshape(padded_rows, _LANES)

    pred2, target2 = _pack(pred), _pack(target)
    mask2 = _pack(mask) if has_mask else None

    tile_spec = pl.BlockSpec((tile_r, _LANES), lambda i: (i, 0))
    part_spec = pl.BlockSpec((8, _LANES), lambda i: (i, 0))      # (nb*8, 128) partials
    part_shape = jax.ShapeDtypeStruct((nb * 8, _LANES), jnp.float32)
    cparams = pltpu.CompilerParams(dimension_semantics=("parallel",),
                                   vmem_limit_bytes=32 * 1024 * 1024)

    # ---- pass 1 (berhu only): global max(|pred - target|) for the dynamic delta ----
    scal = None
    if loss_name == "berhu":
        if dynamic:
            pmax = pl.pallas_call(
                _maxdiff_kernel,
                out_shape=part_shape,
                grid_spec=pltpu.PrefetchScalarGridSpec(
                    num_scalar_prefetch=0, grid=(nb,),
                    in_specs=[tile_spec, tile_spec],
                    out_specs=part_spec),
                compiler_params=cparams,
            )(pred2, target2)
            delta_val = jnp.float32(delta) * jnp.max(pmax)
        else:
            delta_val = jnp.float32(delta)
        inv_denom = 1.0 / (2.0 * delta_val + _F32_EPS)
        scal = jnp.stack([delta_val, inv_denom]).astype(jnp.float32)

    # ---- pass 2: fused err + per-block partial sums (parallel grid) ----
    err_dtype = jnp.promote_types(pred.dtype, target.dtype)
    in_specs, operands = [], []
    if loss_name == "berhu":
        in_specs.append(pl.BlockSpec(memory_space=pltpu.MemorySpace.SMEM))
        operands.append(scal)
    in_specs += [tile_spec, tile_spec]
    operands += [pred2, target2]
    if has_mask:
        in_specs.append(tile_spec)
        operands.append(mask2)

    out_shapes = [jax.ShapeDtypeStruct((padded_rows, _LANES), err_dtype), part_shape]
    out_specs = [tile_spec, part_spec]
    if has_mask:
        out_shapes.append(part_shape)
        out_specs.append(part_spec)

    kernel = functools.partial(_regression_kernel,
                               loss_name=loss_name, has_mask=has_mask)
    results = pl.pallas_call(
        kernel,
        out_shape=tuple(out_shapes),
        grid_spec=pltpu.PrefetchScalarGridSpec(
            num_scalar_prefetch=0, grid=(nb,),
            in_specs=in_specs, out_specs=tuple(out_specs)),
        compiler_params=cparams,
    )(*operands)

    if has_mask:
        err2, esum, msum = results
        denom = jnp.sum(msum)
        mask_out = mask_orig
    else:
        err2, esum = results
        denom = jnp.float32(total)                    # exact sum of the implicit ones
        mask_out = jnp.ones_like(target)

    loss = jnp.sum(esum) / denom
    if needs_pad:
        err = jnp.ravel(err2)[:total].reshape(orig_shape)
    else:
        err = err2.reshape(orig_shape)                # zero-copy path
    return loss, {"err_regr": err, "mask_regr": mask_out}


# --------------------------- pure-JAX reference ---------------------------
def _regression_loss_reference(pred, target, mask=None, loss_name="berhu",
                               delta=0.2, dynamic=True):
    if mask is None:
        mask = jnp.ones_like(target)
    diff = jnp.abs(pred - target)
    if loss_name == "l1":
        per_elem = diff
    elif loss_name == "log_l1":
        per_elem = jnp.log1p(diff)
    else:  # berhu
        d = delta * jnp.max(diff) if dynamic else jnp.float32(delta)
        per_elem = jnp.where(diff <= d, diff,
                             (diff * diff + d * d) / (2.0 * d + _F32_EPS))
    err = mask * per_elem
    loss = err.sum() / mask.sum()
    return loss, err, mask


if __name__ == "__main__":
    key = jax.random.PRNGKey(0)
    kp, kt, km = jax.random.split(key, 3)
    shape = (2, 4, 16, 16)
    pred = jax.random.uniform(kp, shape, dtype=jnp.float32)
    target = jax.random.uniform(kt, shape, dtype=jnp.float32)

    # 1) Default module config: berhu loss, dynamic threshold, mask=None.
    loss, aux = regression_loss(pred, target)
    jax.block_until_ready((loss, aux["err_regr"], aux["mask_regr"]))
    ref_loss, ref_err, ref_mask = _regression_loss_reference(pred, target)
    assert jnp.allclose(loss, ref_loss, rtol=1e-5, atol=1e-6), (loss, ref_loss)
    assert jnp.allclose(aux["err_regr"], ref_err, rtol=1e-5, atol=1e-6)
    assert jnp.allclose(aux["mask_regr"], ref_mask)

    # 2) Masked L1 (exercises the mask stream + msum path).
    mask = (jax.random.uniform(km, shape) > 0.3).astype(jnp.float32)
    loss1, aux1 = regression_loss(pred, target, mask, loss_name="l1")
    jax.block_until_ready(loss1)
    ref_loss1, ref_err1, _ = _regression_loss_reference(pred, target, mask,
                                                        loss_name="l1")
    assert jnp.allclose(loss1, ref_loss1, rtol=1e-5, atol=1e-6)
    assert jnp.allclose(aux1["err_regr"], ref_err1, rtol=1e-5, atol=1e-6)

    # 3) log_l1 on a ragged shape (exercises the minimal-pad path).
    rshape = (3, 5, 7)
    pred_r = jax.random.uniform(kp, rshape, dtype=jnp.float32)
    target_r = jax.random.uniform(kt, rshape, dtype=jnp.float32)
    loss2, aux2 = regression_loss(pred_r, target_r, loss_name="log_l1")
    jax.block_until_ready(loss2)
    ref_loss2, ref_err2, _ = _regression_loss_reference(pred_r, target_r,
                                                        loss_name="log_l1")
    assert jnp.allclose(loss2, ref_loss2, rtol=1e-5, atol=1e-6)
    assert jnp.allclose(aux2["err_regr"], ref_err2, rtol=1e-5, atol=1e-6)

    print("KERNEL_OK")
</pallas_src>

<mosaic_0001>
module attributes {stable_mosaic.version = 11 : i64} {
  func.func @_maxdiff_kernel(%arg0: i32, %arg1: memref<8x128xf32, #tpu.memory_space<vmem>>, %arg2: memref<8x128xf32, #tpu.memory_space<vmem>>, %arg3: memref<8x128xf32, #tpu.memory_space<vmem>>) attributes {dimension_semantics = [#tpu.dimension_semantics<parallel>], iteration_bounds = array<i64: 2>, scalar_prefetch = 0 : i64, scratch_operands = 0 : i64, tpu.core_type = #tpu.core_type<tc>, window_params = [{transform_indices = @transform_0, window_bounds = array<i64: 8, 128>}, {transform_indices = @transform_1, window_bounds = array<i64: 8, 128>}, {transform_indices = @transform_2, window_bounds = array<i64: 8, 128>}]} {
    %c0 = arith.constant 0 : index
    %c0_0 = arith.constant 0 : index
    %0 = vector.load %arg1[%c0, %c0_0] : memref<8x128xf32, #tpu.memory_space<vmem>>, vector<8x128xf32>
    %c0_1 = arith.constant 0 : index
    %c0_2 = arith.constant 0 : index
    %1 = vector.load %arg2[%c0_1, %c0_2] : memref<8x128xf32, #tpu.memory_space<vmem>>, vector<8x128xf32>
    %2 = arith.subf %0, %1 : vector<8x128xf32>
    %3 = math.absf %2 : vector<8x128xf32>
    %4 = vector.shape_cast %3 : vector<8x128xf32> to vector<1x8x128xf32>
    %cst = arith.constant dense<0xFF800000> : vector<8x128xf32>
    %5 = vector.multi_reduction <maximumf>, %4, %cst [0] : vector<1x8x128xf32> to vector<8x128xf32>
    %c0_3 = arith.constant 0 : index
    %c0_4 = arith.constant 0 : index
    %6 = vector.load %arg3[%c0_3, %c0_4] : memref<8x128xf32, #tpu.memory_space<vmem>>, vector<8x128xf32>
    tpu.vector_store %arg3[%c0_3, %c0_4], %5 {strides = array<i32>} : memref<8x128xf32, #tpu.memory_space<vmem>>, vector<8x128xf32>,
    return
  }
  func.func @transform_0(%arg0: i32) -> (i32, i32) {
    %c0_i32 = arith.constant 0 : i32
    %c0_i32_0 = arith.constant 0 : i32
    return %arg0, %c0_i32 : i32, i32
  }
  func.func @transform_1(%arg0: i32) -> (i32, i32) {
    %c0_i32 = arith.constant 0 : i32
    %c0_i32_0 = arith.constant 0 : i32
    return %arg0, %c0_i32 : i32, i32
  }
  func.func @transform_2(%arg0: i32) -> (i32, i32) {
    %c0_i32 = arith.constant 0 : i32
    %c0_i32_0 = arith.constant 0 : i32
    return %arg0, %c0_i32 : i32, i32
  }
}

</mosaic_0001>

<bundles_post_ra>
// kernel: tpu_custom_call.1
= control target key start
LH: loop header
LB: loop body
LE: loop exit
PB: predicated region body
PF: predicated region fallthrough
CT: control target
= control target key end

     0   :  { %7 = vsyncpa [#allocation3], 0  ;;  %s733_s0 = inlined_call_operand.hbm [shape: f32[16,128], index: 0, kind: input, shape index: {}]   ;;  %s734_s1 = inlined_call_operand.hbm [shape: f32[16,128], index: 1, kind: input, shape index: {}]   ;;  %s735_s2 = inlined_call_operand.hbm [shape: f32[16,128], index: 2, kind: output, shape index: {}]  }
   0x1   :  { %9 = vsyncpa [#allocation3 + $0x1], 0 }
   0x2   :  { %10 = vsyncpa [#allocation6], 0 }
   0x3   :  { %12 = vsyncpa [#allocation6 + $0x1], 0 }
   0x4   :  { %13 = vsyncpa [#allocation4], 0 }
   0x5   :  { %15 = vsyncpa [#allocation4 + $0x1], 0  ;;  %s524_s9 = smov 0   ;;  %s526_s10 = smov 0  }
   0x6   :  { %s528_s11 = smov 0   ;;  %s530_s12 = smov 0  }
   0x7 LB: > { %s545_s13 = sadd.s32 4294967295, %s504_s12   ;;  %s308_s14 = sadd.s32 4294967294, %s504_s12   ;;  %s504_s12 = sphi %s530_s12, %s754_s12   ;;  %s500_s11 = sphi %s528_s11, %s753_s11   ;;  %s496_s10 = sphi %s526_s10, %s752_s10   ;;  %s492_s9 = sphi %s524_s9, %s751_s9  }
   0x8   : > { %s549_s15 = sadd.s32 1, %s504_s12   ;;  %s28_s16 = sadd.s32 1, %s500_s11 }
   0x9   : > { %s25_s17 = ssub.s32 %s504_s12, %s549_s15  ;;  %p35_p0 = scmp.ne.s32.totalorder %s500_s11, %s496_s10 }
   0xa   : > { %p26_p1 = scmp.eq.s32.totalorder %s25_s17, 0  ;;  %p36_p2 = scmp.eq.s32.totalorder %s504_s12, 0 }
   0xb   : > { %p41_p3 = scmp.ne.s32.totalorder %s496_s10, %s492_s9  ;;  %p42_p4 = scmp.eq.s32.totalorder %s545_s13, 0 }
   0xc   : > { %s561_s18 = scalar_select %p26_p1, %s500_s11, %s28_s16  }
   0xd   : > { %p563_p5 = por %p36_p2, %p35_p0  ;;  %p567_p6 = por %p42_p4, %p41_p3 }
   0xe   : > { %p91_p7 = scmp.eq.s32.totalorder %s545_s13, 1  ;;  %p97_p8 = scmp.eq.s32.totalorder %s308_s14, 1 }
   0xf   : > { %s739_s20 = scalar_select %p567_p6, 1, 0 }
  0x10   : > { %p340_p10 = scmp.lt.s32.totalorder %s504_s12, 2  ;;  %p574_p11 = por %p91_p7, %p35_p0 }
  0x11   : > { %p578_p12 = por %p97_p8, %p41_p3  ;;  %s583_s23 = sand.u32 1, %s500_s11  }
  0x12   : > { %s740_s21 = scalar_select %p574_p11, 1, 0 }
  0x13   : > { %s741_s22 = scalar_select %p578_p12, 1, 0 }
  0x14   : > { %s312_s24 = sshll.u32 %s504_s12, 7  ;;  %s311_s25 = sshll.u32 %s583_s23, 3 }
  0x15   : > { %s592_s28 = scalar_lea.hbm %s733_s0, %s312_s24  ;;  %s121_s29 = scalar_lea.vmem [#allocation2], %s311_s25 }
  0x16   : > { %s128_s30 = sshll.u32 %s121_s29, 4  ;;  %p598_p13 = pnand %p340_p10, %p563_p5  ;;  %s602_s30 = int_to_ptr.vmem [resolvable:$true] %s128_s30 }
  0x17   : > { %s118_s4 = scalar_lea.sflag [#allocation3], %s583_s23  ;;  %s374_s5 = scalar_lea.hbm %s592_s28, 128 }
  0x18   : > { %p375_p2 = scmp.ne.s32.totalorder %s592_s28, %s374_s5  ;;  %p376_p3 = pneg %p598_p13 }
  0x19   : > { %s379_s8 = scalar_lea.hbm %s733_s0, 256  ;;  %p380_p5 = scmp.lt.u32.totalorder %s592_s28, %s733_s0 }
  0x1a   : > { %p377_p4 = pnand %p376_p3, %p375_p2  ;;  %p381_p8 = scmp.lt.u32.totalorder %s379_s8, %s374_s5 }
  0x1b   : > { %p383_p9 = scmp.lt.u32.totalorder %s374_s5, %s592_s28 }
  0x1c   : > { %p378_p7 = pneg %p377_p4  ;;  %p382_p10 = por %p381_p8, %p380_p5 }
  0x1e   : > { %p384_p0 = por %p383_p9, %p382_p10 }
  0x20   : > { %p385_p1 = pnand %p384_p0, %p378_p7 }
  0x22   : > { %388 = shalt.err (!%p385_p1)
}
  0x23   : > { %s389_s17 = scalar_lea.vmem %s602_s30, 128  ;;  %s506_s19 = smov [#allocation2]  }
  0x24   : > { %p390_p2 = scmp.ne.s32.totalorder %s602_s30, %s389_s17  ;;  %s394_s26 = sshll.u32 %s506_s19, 4  ;;  %s395_s26 = int_to_ptr.vmem [resolvable:$false] %s394_s26 }
  0x25   : > { %s396_s27 = scalar_lea.vmem %s395_s26, 256  ;;  %p397_p11 = scmp.lt.s32.totalorder %s602_s30, %s395_s26 }
  0x26   : > { %p392_p4 = pnand %p390_p2, %p376_p3  ;;  %p398_p5 = scmp.lt.s32.totalorder %s396_s27, %s389_s17 }
  0x28   : > { %p393_p12 = pneg %p392_p4  ;;  %p399_p8 = por %p398_p5, %p397_p11 }
  0x2a   : > { %p400_p9 = pnand %p399_p8, %p393_p12 }
  0x2c   : > { %403 = shalt.err (!%p400_p9)
}
  0x2d   : > { %332 = dma.hbm_to_vmem [thread:$0]  (!%p598_p13), %s592_s28, 128, %s602_s30, %s118_s4  }
  0x2e   : > { %p743_p0 = scmp.lt.s32.totalorder %s504_s12, 3  ;;  %p744_p1 = scmp.ge.s32.totalorder %s504_s12, 1 }
  0x2f   : > { %s645_s7 = scalar_lea.hbm %s734_s1, %s312_s24  ;;  %s139_s8 = scalar_lea.vmem [#allocation5], %s311_s25 }
  0x30   : > { %p636_p7 = pnand %p744_p1, %p743_p0  ;;  %s146_s14 = sshll.u32 %s139_s8, 4  ;;  %s147_s14 = int_to_ptr.vmem [resolvable:$true] %s146_s14 }
  0x31   : > { %s136_s28 = scalar_lea.sflag [#allocation6], %s583_s23  ;;  %s404_s30 = scalar_lea.hbm %s645_s7, 128 }
  0x32   : > { %s745_s29 = scalar_select %p636_p7, 1, 0 }
  0x33   : > { %p405_p11 = scmp.ne.s32.totalorder %s645_s7, %s404_s30  ;;  %s409_s24 = scalar_lea.hbm %s734_s1, 256 }
  0x34   : > { %p410_p2 = scmp.lt.u32.totalorder %s645_s7, %s734_s1  ;;  %p411_p4 = scmp.lt.u32.totalorder %s409_s24, %s404_s30 }
  0x35   : > { %p407_p12 = pnand %p405_p11, %p376_p3  ;;  %p413_p8 = scmp.lt.u32.totalorder %s404_s30, %s645_s7 }
  0x36   : > { %p412_p5 = por %p411_p4, %p410_p2 }
  0x37   : > { %p408_p10 = pneg %p407_p12 }
  0x38   : > { %p414_p9 = por %p413_p8, %p412_p5 }
  0x3a   : > { %p415_p0 = pnand %p414_p9, %p408_p10 }
  0x3c   : > { %418 = shalt.err (!%p415_p0)
}
  0x3d   : > { %s419_s23 = scalar_lea.vmem %s147_s14, 128  ;;  %s507_s25 = smov [#allocation5]  }
  0x3e   : > { %p420_p1 = scmp.ne.s32.totalorder %s147_s14, %s419_s23  ;;  %s424_s26 = sshll.u32 %s507_s25, 4  ;;  %s425_s26 = int_to_ptr.vmem [resolvable:$false] %s424_s26 }
  0x3f   : > { %s426_s27 = scalar_lea.vmem %s425_s26, 256  ;;  %p427_p6 = scmp.lt.s32.totalorder %s147_s14, %s425_s26 }
  0x40   : > { %p422_p11 = pnand %p420_p1, %p376_p3  ;;  %p428_p7 = scmp.lt.s32.totalorder %s426_s27, %s419_s23 }
  0x42   : > { %p423_p12 = pneg %p422_p11  ;;  %p429_p2 = por %p428_p7, %p427_p6 }
  0x44   : > { %p430_p4 = pnand %p429_p2, %p423_p12 }
  0x46   : > { %433 = shalt.err (!%p430_p4)
}
  0x47   : > { %335 = dma.hbm_to_vmem [thread:$0]  (!%p598_p13), %s645_s7, 128, %s147_s14, %s136_s28  }
  0x48   : > { %p746_p10 = scmp.ne.s32.totalorder %s745_s29, 0 }
  0x49   : > { %s672_s5 = sand.u32 (!%p746_p10), 1, %s496_s10   ;;  %p747_p3 = scmp.ne.s32.totalorder (!%p746_p10), %s739_s20, 0 }
  0x4a   : > { %155 = sbr.rel (%p746_p10) target bundleno = 110 (0x6e), region = 28  ;;  %s316_s6 = sshll.u32 (!%p746_p10), %s672_s5, 3 }
  0x4b   : > { %s158_s8 = scalar_lea.sflag (!%p746_p10), [#allocation3], %s672_s5  ;;  %s161_s30 = scalar_lea.vmem (!%p746_p10), [#allocation2], %s316_s6 }
  0x51   : > { %479 = dma.done.wait (%p747_p3), %s158_s8, 128  }
  0x52   : > { %481 = vsyncadd (%p747_p3), %s158_s8, 4294967168  ;;  %s167_s3 = scalar_lea.sflag [#allocation6], %s672_s5  ;;  %s170_s7 = scalar_lea.vmem [#allocation5], %s316_s6 }
  0x53   : > { %483 = dma.done.wait (%p747_p3), %s167_s3, 128  }
  0x54   : > { %485 = vsyncadd (%p747_p3), %s167_s3, 4294967168  ;;  %v196_v0 = vld [vmem:[%s161_s30] sm:$0xff]  ;;  %v197_v1 = vld [vmem:[%s170_s7] sm:$0xff]  ;;  %s195_s29 = scalar_lea.vmem [#allocation7], %s316_s6  ;;  %s320_s28 = sshll.u32 %s545_s13, 7 }
  0x55   : > { %s215_s14 = sshll.u32 %s195_s29, 4  ;;  %v198_v2 = vsub.f32 %v196_v0, %v197_v1  ;;  %s691_s20 = scalar_lea.hbm %s735_s2, %s320_s28  ;;  %s686_s14 = int_to_ptr.vmem [resolvable:$true] %s215_s14 }
  0x56   : > { %s202_s24 = scalar_lea.sflag [#allocation4], %s672_s5  ;;  %s434_s17 = scalar_lea.vmem %s686_s14, 128 }
  0x57   : > { %v199_v3 = vand.u32 2147483647, %v198_v2  ;;  %p435_p6 = scmp.ne.s32.totalorder %s686_s14, %s434_s17  ;;  %p748_p13 = scmp.ne.s32.totalorder %s740_s21, 0 }
  0x58   : > { %s508_s13 = smov [#allocation7]  }
  0x59   : > { %200 = vst [vmem:[%s195_s29] sm:$0xff] %v199_v3  ;;  %p436_p7 = pnand %p435_p6, %p748_p13  ;;  %s438_s19 = sshll.u32 %s508_s13, 4  ;;  %s439_s19 = int_to_ptr.vmem [resolvable:$false] %s438_s19 }
  0x5a   : > { %s440_s23 = scalar_lea.vmem %s439_s19, 256  ;;  %p441_p8 = scmp.lt.s32.totalorder %s686_s14, %s439_s19 }
  0x5b   : > { %p437_p5 = pneg %p436_p7  ;;  %p442_p9 = scmp.lt.s32.totalorder %s440_s23, %s434_s17 }
  0x5d   : > { %p443_p0 = por %p442_p9, %p441_p8 }
  0x5f   : > { %p444_p1 = pnand %p443_p0, %p437_p5 }
  0x61   : > { %447 = shalt.err (!%p444_p1)
}
  0x62   : > { %s448_s25 = scalar_lea.hbm %s691_s20, 128  ;;  %s452_s5 = scalar_lea.hbm %s735_s2, 256 }
  0x63   : > { %p449_p11 = scmp.ne.s32.totalorder %s691_s20, %s448_s25  ;;  %p453_p4 = scmp.lt.u32.totalorder %s691_s20, %s735_s2 }
  0x64   : > { %p454_p10 = scmp.lt.u32.totalorder %s452_s5, %s448_s25  ;;  %p456_p6 = scmp.lt.u32.totalorder %s448_s25, %s691_s20 }
  0x65   : > { %p450_p12 = pnand %p449_p11, %p748_p13 }
  0x66   : > { %p455_p3 = por %p454_p10, %p453_p4 }
  0x67   : > { %p451_p2 = pneg %p450_p12 }
  0x68   : > { %p457_p7 = por %p456_p6, %p455_p3 }
  0x6a   : > { %p458_p5 = pnand %p457_p7, %p451_p2 }
  0x6c   : > { %461 = shalt.err (!%p458_p5)
}
  0x6d   : > { %327 = dma.vmem_to_hbm [thread:$0]  (%p748_p13), %s686_s14, 128, %s691_s20, %s202_s24  }
  0x6e PF: > { %s227_s30 = sand.u32 1, %s492_s9   ;;  %p749_p8 = scmp.ne.s32.totalorder %s741_s22, 0 }
  0x6f   : > { %p750_p9 = scmp.ge.s32.totalorder %s504_s12, 2  ;;  %s228_s3 = scalar_lea.sflag [#allocation4], %s227_s30 }
  0x71   : > { %p337_p0 = pnand %p750_p9, %p749_p8 }
  0x73   : > { %487 = dma.done.wait (!%p337_p0), %s228_s3, 128  }
  0x74   : > { %489 = vsyncadd (!%p337_p0), %s228_s3, 4294967168  ;;  %p18_p1 = scmp.ge.s32.totalorder %s549_s15, 4   ;;  %s751_s9 = smov %s496_s10 }
  0x75   : > { %s752_s10 = smov %s500_s11  ;;  %s753_s11 = smov %s561_s18 }
  0x76   : > { %s754_s12 = smov %s549_s15  ;;  %20 = sbr.rel (!%p18_p1) target bundleno = 7 (0x7), region = 86 }
  0x7d   :  { %233 = vsyncpa [#allocation3], 1 }
  0x7e   :  { %235 = vsyncpa [#allocation3 + $0x1], 1 }
  0x7f   :  { %236 = vsyncpa [#allocation6], 1 }
  0x80   :  { %238 = vsyncpa [#allocation6 + $0x1], 1 }
  0x81   :  { %239 = vsyncpa [#allocation4], 1 }
  0x82   :  { %241 = vsyncpa [#allocation4 + $0x1], 1 }

</bundles_post_ra>
